<compile_context>
chip_gen: v7x
topology: tpu7x:2x2x1
jax: 0.10.0
libtpu: 0.0.40
codegen_flags: <defaults>
</compile_context>

<pallas_src>
import jax
import jax.numpy as jnp
import numpy as np
from jax.experimental import pallas as pl
from jax.experimental.pallas import tpu as pltpu

# ---- model hyper-parameters (small, consistent with the module) -------------
NUM_PAST_WINDOWS = 2
ACTION_SPACE_SIZE = 6
WINDOW_SIZE = 128            # small stand-in for the module's 1024
HIDDEN = 256                 # hard-coded in the module
BATCH = 32
B_TILE = 32                  # full padded batch -> grid == (1,) at this size

INPUT_DIM = WINDOW_SIZE + NUM_PAST_WINDOWS * WINDOW_SIZE + NUM_PAST_WINDOWS * ACTION_SPACE_SIZE
# +1 column for the folded gate bias; lane-align the contraction dim (397 -> 512).
D_PAD = ((INPUT_DIM + 1 + 127) // 128) * 128
HEAD_OUT = ACTION_SPACE_SIZE + 1                # fused actor(6) + critic(1) columns
HEAD_PAD = 128                                  # lane-dense fused head / output width


# ---- Pallas kernel: fused LSTM step (forget gate pruned) + fused f32 heads ---
def actor_critic_kernel(x_ref, wg_ref, wh_ref, bh_ref, out_ref):
    H = HIDDEN
    x = x_ref[...]                                     # (Bt, D_PAD) bf16; col INPUT_DIM == 1.0 (bias)
    # Gate pre-activations for i, g, o only (f is dead since c0 == 0); bias folded
    # into the extra weight row picked up by the ones column.  (Bt, 3H) f32.
    gates = jnp.dot(x, wg_ref[...], preferred_element_type=jnp.float32)
    i_g = jax.nn.sigmoid(gates[:, 0 * H:1 * H])        # input gate
    g_g = jnp.tanh(gates[:, 1 * H:2 * H])              # cell candidate
    o_g = jax.nn.sigmoid(gates[:, 2 * H:3 * H])        # output gate
    h = o_g * jnp.tanh(i_g * g_g)                      # (Bt, H) f32 == lstm_out[:, -1, :]
    # Fused actor+critic head in f32 -> one lane-dense (Bt, 128) store
    # (cols 0..5 = actor, col 6 = critic, cols 7..127 = padding).
    head = jnp.dot(h, wh_ref[...], preferred_element_type=jnp.float32) + bh_ref[...]
    out_ref[...] = jax.nn.sigmoid(head)


def actor_critic_forward(current_window, past_windows, past_actions, kp):
    B = current_window.shape[0]
    pw_flat = past_windows.reshape(B, NUM_PAST_WINDOWS * WINDOW_SIZE)
    pa_flat = past_actions.reshape(B, NUM_PAST_WINDOWS * ACTION_SPACE_SIZE)
    x = jnp.concatenate([current_window, pw_flat, pa_flat], axis=1)   # (B, 396) f32
    bp = pl.cdiv(B, B_TILE) * B_TILE
    # Zero-pad batch to a tile multiple and features to the lane-aligned width,
    # then plant the bias column (picks up the bias row folded into w_gates).
    x = jnp.pad(x, ((0, bp - B), (0, D_PAD - INPUT_DIM)))
    x = x.at[:, INPUT_DIM].set(1.0)
    x = x.astype(jnp.bfloat16)

    out = pl.pallas_call(
        actor_critic_kernel,
        out_shape=jax.ShapeDtypeStruct((bp, HEAD_PAD), jnp.float32),
        grid=(bp // B_TILE,),
        in_specs=[
            pl.BlockSpec((B_TILE, D_PAD), lambda b: (b, 0)),        # streamed activations
            pl.BlockSpec((D_PAD, 3 * HIDDEN), lambda b: (0, 0)),    # resident LSTM weight (+bias row), bf16
            pl.BlockSpec((HIDDEN, HEAD_PAD), lambda b: (0, 0)),     # resident fused head weight, f32
            pl.BlockSpec((1, HEAD_PAD), lambda b: (0, 0)),          # resident head bias, f32
        ],
        out_specs=pl.BlockSpec((B_TILE, HEAD_PAD), lambda b: (b, 0)),
        compiler_params=pltpu.CompilerParams(
            # No megacore split: weight-DMA bound kernel; a "parallel" batch axis
            # would duplicate the dominant weight fetch into each v7x TensorCore.
            dimension_semantics=("arbitrary",),
            vmem_limit_bytes=32 * 1024 * 1024),                     # headroom for WINDOW_SIZE=1024
    )(x, kp["w_gates"], kp["w_head"], kp["b_head"])

    out = out[:B]
    actions = out[:, :ACTION_SPACE_SIZE]
    value = out[:, ACTION_SPACE_SIZE:HEAD_OUT]
    return actions, value


# ---- deterministic parameter init (PyTorch-style uniform) -------------------
def _bf16_quantize(x):
    # Stored as f32 values that are exactly bf16-representable, so the f32
    # reference and the bf16 kernel consume identical weight/activation values.
    return x.astype(jnp.bfloat16).astype(jnp.float32)


def init_raw_params(key):
    """Parameters in native PyTorch layout (used by the reference)."""
    k = 1.0 / np.sqrt(HIDDEN)
    ks = jax.random.split(key, 7)
    u = lambda kk, shape: jax.random.uniform(kk, shape, jnp.float32, -k, k)
    return {
        "w_ih": _bf16_quantize(u(ks[0], (4 * HIDDEN, INPUT_DIM))),   # kernel carries this in bf16
        "b_ih": u(ks[1], (4 * HIDDEN,)),
        "b_hh": u(ks[2], (4 * HIDDEN,)),
        "w_actor": u(ks[3], (ACTION_SPACE_SIZE, HIDDEN)),            # head stays f32 in the kernel
        "b_actor": u(ks[4], (ACTION_SPACE_SIZE,)),
        "w_critic": u(ks[5], (1, HIDDEN)),
        "b_critic": u(ks[6], (1,)),
    }


def pack_params(raw):
    """Kernel-side packing: prune forget gate, transpose, pad, fold gate bias, fuse heads."""
    H = HIDDEN
    # Keep only i, g, o gate rows (forget gate multiplies c0 == 0).
    rows = jnp.concatenate(
        [raw["w_ih"][0:H], raw["w_ih"][2 * H:3 * H], raw["w_ih"][3 * H:4 * H]], axis=0)  # (3H, D)
    b_all = raw["b_ih"] + raw["b_hh"]
    b_gates = jnp.concatenate([b_all[0:H], b_all[2 * H:3 * H], b_all[3 * H:4 * H]])      # (3H,)
    w_gates = jnp.zeros((D_PAD, 3 * H), jnp.float32)
    w_gates = w_gates.at[:INPUT_DIM, :].set(rows.T)
    w_gates = w_gates.at[INPUT_DIM, :].set(b_gates)     # bias row, picked up by x[:, INPUT_DIM] == 1.0
    # Fused actor/critic head, zero-padded to a lane-dense 128-wide output. Kept f32.
    w_head = jnp.zeros((H, HEAD_PAD), jnp.float32)
    w_head = w_head.at[:, :ACTION_SPACE_SIZE].set(raw["w_actor"].T)
    w_head = w_head.at[:, ACTION_SPACE_SIZE:HEAD_OUT].set(raw["w_critic"].T)
    b_head = jnp.zeros((1, HEAD_PAD), jnp.float32)
    b_head = b_head.at[0, :ACTION_SPACE_SIZE].set(raw["b_actor"])
    b_head = b_head.at[0, ACTION_SPACE_SIZE:HEAD_OUT].set(raw["b_critic"])
    return {
        "w_gates": w_gates.astype(jnp.bfloat16),   # (D_PAD, 3H) bf16 (weights pre-quantized; bias row ~bf16)
        "w_head": w_head,                          # (H, 128) f32
        "b_head": b_head,                          # (1, 128) f32
    }


# ---- pure-JAX reference (full PyTorch semantics) for correctness check ------
def reference_forward(current_window, past_windows, past_actions, raw):
    B = current_window.shape[0]
    x = jnp.concatenate(
        [current_window, past_windows.reshape(B, -1), past_actions.reshape(B, -1)], axis=1)
    x = _bf16_quantize(x)                          # same activation quantization the kernel sees
    gates = x @ raw["w_ih"].T + raw["b_ih"] + raw["b_hh"]
    H = HIDDEN
    i = jax.nn.sigmoid(gates[:, 0:H])
    f = jax.nn.sigmoid(gates[:, H:2 * H])          # multiplies c0 == 0
    g = jnp.tanh(gates[:, 2 * H:3 * H])
    o = jax.nn.sigmoid(gates[:, 3 * H:4 * H])
    c = f * 0.0 + i * g
    h = o * jnp.tanh(c)
    actions = jax.nn.sigmoid(h @ raw["w_actor"].T + raw["b_actor"])
    value = jax.nn.sigmoid(h @ raw["w_critic"].T + raw["b_critic"])
    return actions, value


if __name__ == "__main__":
    key = jax.random.PRNGKey(0)
    k_param, k_cw, k_pw, k_pa = jax.random.split(key, 4)
    raw = init_raw_params(k_param)
    kp = pack_params(raw)

    current_window = jax.random.normal(k_cw, (BATCH, WINDOW_SIZE), jnp.float32)
    past_windows = jax.random.normal(k_pw, (BATCH, NUM_PAST_WINDOWS, WINDOW_SIZE), jnp.float32)
    past_actions = jax.random.normal(k_pa, (BATCH, NUM_PAST_WINDOWS, ACTION_SPACE_SIZE), jnp.float32)

    actions, value = actor_critic_forward(current_window, past_windows, past_actions, kp)
    actions = jax.block_until_ready(actions)
    value = jax.block_until_ready(value)

    ref_actions, ref_value = reference_forward(current_window, past_windows, past_actions, raw)
    # bf16 LSTM weights/activations with f32 accumulation and a bf16-quantized
    # folded gate bias -> slightly loosened tolerance (head path is full f32).
    np.testing.assert_allclose(np.asarray(actions), np.asarray(ref_actions), rtol=2e-3, atol=2e-3)
    np.testing.assert_allclose(np.asarray(value), np.asarray(ref_value), rtol=2e-3, atol=2e-3)

    assert actions.shape == (BATCH, ACTION_SPACE_SIZE)
    assert value.shape == (BATCH, 1)
    print("KERNEL_OK")
</pallas_src>

<mosaic_0001>
module attributes {stable_mosaic.version = 11 : i64} {
  func.func @actor_critic_kernel(%arg0: i32, %arg1: memref<32x512xbf16, #tpu.memory_space<vmem>>, %arg2: memref<512x768xbf16, #tpu.memory_space<vmem>>, %arg3: memref<256x128xf32, #tpu.memory_space<vmem>>, %arg4: memref<1x128xf32, #tpu.memory_space<vmem>>, %arg5: memref<32x128xf32, #tpu.memory_space<vmem>>) attributes {dimension_semantics = [#tpu.dimension_semantics<arbitrary>], iteration_bounds = array<i64: 1>, scalar_prefetch = 0 : i64, scratch_operands = 0 : i64, tpu.core_type = #tpu.core_type<tc>, window_params = [{transform_indices = @transform_0, window_bounds = array<i64: 32, 512>}, {pipeline_mode = #tpu.pipeline_mode<synchronous>, transform_indices = @transform_1, window_bounds = array<i64: 512, 768>}, {pipeline_mode = #tpu.pipeline_mode<synchronous>, transform_indices = @transform_2, window_bounds = array<i64: 256, 128>}, {pipeline_mode = #tpu.pipeline_mode<synchronous>, transform_indices = @transform_3, window_bounds = array<i64: 1, 128>}, {transform_indices = @transform_4, window_bounds = array<i64: 32, 128>}]} {
    %c0 = arith.constant 0 : index
    %c0_0 = arith.constant 0 : index
    %0 = vector.load %arg1[%c0, %c0_0] : memref<32x512xbf16, #tpu.memory_space<vmem>>, vector<32x512xbf16>
    %c0_1 = arith.constant 0 : index
    %c0_2 = arith.constant 0 : index
    %1 = vector.load %arg2[%c0_1, %c0_2] : memref<512x768xbf16, #tpu.memory_space<vmem>>, vector<512x768xbf16>
    %cst = arith.constant dense<0.000000e+00> : vector<32x768xf32>
    %2 = tpu.matmul %0, %1, %cst {dimension_numbers = #tpu.dot_dimension_numbers<[1], [0], [0], [1], [0, 0, 1, 1], [], []>} : vector<32x512xbf16>, vector<512x768xbf16>, vector<32x768xf32> -> vector<32x768xf32>
    %3 = vector.extract_strided_slice %2 {offsets = [0, 0], sizes = [32, 256], strides = [1, 1]} : vector<32x768xf32> to vector<32x256xf32>
    %4 = arith.negf %3 : vector<32x256xf32>
    %5 = math.exp %4 : vector<32x256xf32>
    %cst_3 = arith.constant 1.000000e+00 : f32
    %6 = vector.broadcast %cst_3 : f32 to vector<32x256xf32>
    %7 = arith.addf %6, %5 : vector<32x256xf32>
    %8 = arith.divf %6, %7 : vector<32x256xf32>
    %9 = vector.extract_strided_slice %2 {offsets = [0, 256], sizes = [32, 256], strides = [1, 1]} : vector<32x768xf32> to vector<32x256xf32>
    %10 = math.tanh %9 : vector<32x256xf32>
    %11 = vector.extract_strided_slice %2 {offsets = [0, 512], sizes = [32, 256], strides = [1, 1]} : vector<32x768xf32> to vector<32x256xf32>
    %12 = arith.negf %11 : vector<32x256xf32>
    %13 = math.exp %12 : vector<32x256xf32>
    %cst_4 = arith.constant 1.000000e+00 : f32
    %14 = vector.broadcast %cst_4 : f32 to vector<32x256xf32>
    %15 = arith.addf %14, %13 : vector<32x256xf32>
    %16 = arith.divf %14, %15 : vector<32x256xf32>
    %17 = arith.mulf %8, %10 : vector<32x256xf32>
    %18 = math.tanh %17 : vector<32x256xf32>
    %19 = arith.mulf %16, %18 : vector<32x256xf32>
    %c0_5 = arith.constant 0 : index
    %c0_6 = arith.constant 0 : index
    %20 = vector.load %arg3[%c0_5, %c0_6] : memref<256x128xf32, #tpu.memory_space<vmem>>, vector<256x128xf32>
    %cst_7 = arith.constant dense<0.000000e+00> : vector<32x128xf32>
    %21 = tpu.matmul %19, %20, %cst_7 {dimension_numbers = #tpu.dot_dimension_numbers<[1], [0], [0], [1], [0, 0, 1, 1], [], []>} : vector<32x256xf32>, vector<256x128xf32>, vector<32x128xf32> -> vector<32x128xf32>
    %c0_8 = arith.constant 0 : index
    %c0_9 = arith.constant 0 : index
    %22 = vector.load %arg4[%c0_8, %c0_9] : memref<1x128xf32, #tpu.memory_space<vmem>>, vector<1x128xf32>
    %23 = vector.broadcast %22 : vector<1x128xf32> to vector<32x128xf32>
    %24 = arith.addf %21, %23 : vector<32x128xf32>
    %25 = arith.negf %24 : vector<32x128xf32>
    %26 = math.exp %25 : vector<32x128xf32>
    %cst_10 = arith.constant 1.000000e+00 : f32
    %27 = vector.broadcast %cst_10 : f32 to vector<32x128xf32>
    %28 = arith.addf %27, %26 : vector<32x128xf32>
    %29 = arith.divf %27, %28 : vector<32x128xf32>
    %c0_11 = arith.constant 0 : index
    %c0_12 = arith.constant 0 : index
    %30 = vector.load %arg5[%c0_11, %c0_12] : memref<32x128xf32, #tpu.memory_space<vmem>>, vector<32x128xf32>
    tpu.vector_store %arg5[%c0_11, %c0_12], %29 {strides = array<i32>} : memref<32x128xf32, #tpu.memory_space<vmem>>, vector<32x128xf32>,
    return
  }
  func.func @transform_0(%arg0: i32) -> (i32, i32) {
    %c0_i32 = arith.constant 0 : i32
    %c0_i32_0 = arith.constant 0 : i32
    return %arg0, %c0_i32 : i32, i32
  }
  func.func @transform_1(%arg0: i32) -> (i32, i32) {
    %c0_i32 = arith.constant 0 : i32
    %c0_i32_0 = arith.constant 0 : i32
    %c0_i32_1 = arith.constant 0 : i32
    return %c0_i32, %c0_i32_0 : i32, i32
  }
  func.func @transform_2(%arg0: i32) -> (i32, i32) {
    %c0_i32 = arith.constant 0 : i32
    %c0_i32_0 = arith.constant 0 : i32
    %c0_i32_1 = arith.constant 0 : i32
    return %c0_i32, %c0_i32_0 : i32, i32
  }
  func.func @transform_3(%arg0: i32) -> (i32, i32) {
    %c0_i32 = arith.constant 0 : i32
    %c0_i32_0 = arith.constant 0 : i32
    %c0_i32_1 = arith.constant 0 : i32
    return %c0_i32, %c0_i32_0 : i32, i32
  }
  func.func @transform_4(%arg0: i32) -> (i32, i32) {
    %c0_i32 = arith.constant 0 : i32
    %c0_i32_0 = arith.constant 0 : i32
    return %arg0, %c0_i32 : i32, i32
  }
}

</mosaic_0001>

<bundles_post_ra>
// kernel: tpu_custom_call.1
= control target key start
LH: loop header
LB: loop body
LE: loop exit
PB: predicated region body
PF: predicated region fallthrough
CT: control target
= control target key end

     0   :  { %9 = vsyncpa [#allocation3], 0  ;;  %s2884_s0 = inlined_call_operand.hbm [shape: bf16[32,512], index: 0, kind: input, shape index: {}]   ;;  %s2885_s1 = inlined_call_operand.hbm [shape: bf16[512,768], index: 1, kind: input, shape index: {}]   ;;  %s2886_s2 = inlined_call_operand.hbm [shape: f32[256,128], index: 2, kind: input, shape index: {}]   ;;  %s2887_s3 = inlined_call_operand.vmem [shape: f32[1,128], index: 3, kind: input, shape index: {}]   ;;  %s2888_s4 = inlined_call_operand.hbm [shape: f32[32,128], index: 4, kind: output, shape index: {}]  }
   0x1   :  { %10 = vsyncpa [#allocation6], 0 }
   0x2   :  { %11 = vsyncpa [#allocation4], 0  ;;  %s2728_s15 = smov [#allocation5]   ;;  %s2634_s19 = scalar_lea.hbm %s2885_s1, 24576 }
   0x3   :  { %s29_s16 = sshll.u32 %s2728_s15, 4  ;;  %p2635_p0 = scmp.ne.s32.totalorder %s2885_s1, %s2634_s19  ;;  %s30_s16 = int_to_ptr.vmem [resolvable:$true] %s29_s16 }
   0x4   :  { %p2638_p1 = scmp.lt.u32.totalorder %s2634_s19, %s2885_s1 }
   0x6   :  { %p2640_p2 = pnand %p2638_p1, %p2635_p0 }
   0x8   :  { %2643 = shalt.err (!%p2640_p2)
}
   0x9   :  { %s2644_s24 = scalar_lea.vmem %s30_s16, 24576  ;;  %p2649_p4 = scmp.lt.s32.totalorder %s30_s16, %s30_s16 }
   0xa   :  { %p2645_p3 = scmp.ne.s32.totalorder %s30_s16, %s2644_s24  ;;  %p2650_p5 = scmp.lt.s32.totalorder %s2644_s24, %s2644_s24 }
   0xc   :  { %p2651_p6 = por %p2650_p5, %p2649_p4 }
   0xe   :  { %p2652_p7 = pnand %p2651_p6, %p2645_p3 }
  0x10   :  { %2655 = shalt.err (!%p2652_p7)
}
  0x11   :  { %s2729_s25 = smov 384   ;;  %s2730_s26 = smov 24  }
  0x12   :  { %35 = dma.hbm_to_vmem [thread:$0]  %s2885_s1, 24576, %s30_s16, [#allocation6], %s2729_s25, %s2729_s25, %s2730_s26  }
  0x13   :  { %s2731_s29 = smov [#allocation2]   ;;  %s2656_s7 = scalar_lea.hbm %s2884_s0, 1024 }
  0x14   :  { %s17_s30 = sshll.u32 %s2731_s29, 4  ;;  %p2657_p8 = scmp.ne.s32.totalorder %s2884_s0, %s2656_s7  ;;  %s18_s30 = int_to_ptr.vmem [resolvable:$true] %s17_s30 }
  0x15   :  { %p2660_p9 = scmp.lt.u32.totalorder %s2656_s7, %s2884_s0 }
  0x17   :  { %p2662_p10 = pnand %p2660_p9, %p2657_p8 }
  0x19   :  { %2665 = shalt.err (!%p2662_p10)
}
  0x1a   :  { %s2666_s12 = scalar_lea.vmem %s18_s30, 1024  ;;  %p2671_p12 = scmp.lt.s32.totalorder %s18_s30, %s18_s30 }
  0x1b   :  { %p2667_p11 = scmp.ne.s32.totalorder %s18_s30, %s2666_s12  ;;  %p2672_p13 = scmp.lt.s32.totalorder %s2666_s12, %s2666_s12 }
  0x1d   :  { %p2673_p0 = por %p2672_p13, %p2671_p12 }
  0x1f   :  { %p2674_p1 = pnand %p2673_p0, %p2667_p11 }
  0x21   :  { %2677 = shalt.err (!%p2674_p1)
}
  0x22   :  { %s2732_s1 = smov 256   ;;  %s2733_s13 = smov 16  }
  0x23   :  { %23 = dma.hbm_to_vmem [thread:$0]  %s2884_s0, 1024, %s18_s30, [#allocation3], %s2732_s1, %s2732_s1, %s2733_s13  }
  0x24   :  { %s2734_s16 = smov [#allocation7]   ;;  %s2678_s20 = scalar_lea.hbm %s2886_s2, 4096 }
  0x25   :  { %s41_s17 = sshll.u32 %s2734_s16, 4  ;;  %p2679_p2 = scmp.ne.s32.totalorder %s2886_s2, %s2678_s20  ;;  %s42_s17 = int_to_ptr.vmem [resolvable:$true] %s41_s17 }
  0x26   :  { %p2682_p3 = scmp.lt.u32.totalorder %s2678_s20, %s2886_s2 }
  0x28   :  { %p2684_p4 = pnand %p2682_p3, %p2679_p2 }
  0x2a   :  { %2687 = shalt.err (!%p2684_p4)
}
  0x2b   :  { %s2688_s25 = scalar_lea.vmem %s42_s17, 4096  ;;  %p2693_p6 = scmp.lt.s32.totalorder %s42_s17, %s42_s17 }
  0x2c   :  { %p2689_p5 = scmp.ne.s32.totalorder %s42_s17, %s2688_s25  ;;  %p2694_p7 = scmp.lt.s32.totalorder %s2688_s25, %s2688_s25 }
  0x2e   :  { %p2695_p8 = por %p2694_p7, %p2693_p6 }
  0x30   :  { %p2696_p9 = pnand %p2695_p8, %p2689_p5 }
  0x32   :  { %2699 = shalt.err (!%p2696_p9)
}
  0x33   :  { %s2735_s0 = smov 128   ;;  %s2736_s26 = smov 8  }
  0x34   :  { %47 = dma.hbm_to_vmem [thread:$0]  %s2886_s2, 4096, %s42_s17, [#allocation6], %s2735_s0, %s2735_s0, %s2736_s26  }
  0x35   :  { %2722 = dma.done.wait [#allocation3], 1024  }
  0x36   :  { %2723 = vsyncadd [#allocation3], 4294966272 }
  0x37   :  { %2724 = dma.done.wait [#allocation6], 28672  }
  0x38   :  { %2725 = vsyncadd [#allocation6], 4294938624  ;;  %v2222_v0 = vld [vmem:[#allocation5 + $0x4] ss:$24 sps:$4 sm:$0xff]   ;;  %v2226_v2 = vld [vmem:[#allocation5] ss:$24 sps:$4 sm:$0xff]  }
  0x39   :  { %v2224_v1 = vld [vmem:[#allocation5 + $0x304] ss:$24 sps:$4 sm:$0xff]   ;;  %1259 = vmatprep.subr.bf16.mxu1 %v2222_v0  ;;  %v2227_v3 = vld [vmem:[#allocation5 + $0x300] ss:$24 sps:$4 sm:$0xff]   ;;  %v2228_v4 = vld [vmem:[#allocation5 + $0x34] ss:$24 sps:$4 sm:$0xff]  }
  0x3a   :  { %1312 = vmatprep.subr.bf16.mxu0 %v2224_v1  ;;  %1260 = vmatpush1.bf16.msra.mxu1 %v2226_v2  ;;  %v2230_v5 = vld [vmem:[#allocation5 + $0x334] ss:$24 sps:$4 sm:$0xff]   ;;  %v2232_v6 = vld [vmem:[#allocation5 + $0x30] ss:$24 sps:$4 sm:$0xff]   ;;  %v2234_v8 = vld [vmem:[#allocation5 + $0x64] ss:$24 sps:$4 sm:$0xff]  }
  0x3b   :  { %1313 = vmatpush1.bf16.msra.mxu0 %v2227_v3  ;;  %1261 = vmatprep.subr.bf16.mxu1 %v2228_v4  ;;  %v2233_v7 = vld [vmem:[#allocation5 + $0x330] ss:$24 sps:$4 sm:$0xff]   ;;  %v2236_v9 = vld [vmem:[#allocation5 + $0x364] ss:$24 sps:$4 sm:$0xff]   ;;  %v2238_v10 = vld [vmem:[#allocation5 + $0x60] ss:$24 sps:$4 sm:$0xff]  }
  0x3c   :  { %1314 = vmatprep.subr.bf16.mxu0 %v2230_v5  ;;  %v2239_v11 = vld [vmem:[#allocation5 + $0x360] ss:$24 sps:$4 sm:$0xff]   ;;  %v2240_v12 = vld [vmem:[#allocation5 + $0x94] ss:$24 sps:$4 sm:$0xff]   ;;  %v2244_v14 = vld [vmem:[#allocation5 + $0x90] ss:$24 sps:$4 sm:$0xff]  }
  0x3d   :  { %v2242_v13 = vld [vmem:[#allocation5 + $0x394] ss:$24 sps:$4 sm:$0xff]   ;;  %v2245_v15 = vld [vmem:[#allocation5 + $0x390] ss:$24 sps:$4 sm:$0xff]   ;;  %v2246_v16 = vld [vmem:[#allocation5 + $0xc4] ss:$24 sps:$4 sm:$0xff]  }
  0x3e   :  { %1262 = vmatpush1.bf16.msra.mxu1 %v2232_v6  ;;  %v2248_v17 = vld [vmem:[#allocation5 + $0x3c4] ss:$24 sps:$4 sm:$0xff]   ;;  %v2250_v18 = vld [vmem:[#allocation5 + $0xc0] ss:$24 sps:$4 sm:$0xff]   ;;  %v2252_v20 = vld [vmem:[#allocation5 + $0xf4] ss:$24 sps:$4 sm:$0xff]  }
  0x3f   :  { %1315 = vmatpush1.bf16.msra.mxu0 %v2233_v7  ;;  %1263 = vmatprep.subr.bf16.mxu1 %v2234_v8  ;;  %v2251_v19 = vld [vmem:[#allocation5 + $0x3c0] ss:$24 sps:$4 sm:$0xff]   ;;  %v2254_v21 = vld [vmem:[#allocation5 + $0x3f4] ss:$24 sps:$4 sm:$0xff]   ;;  %v2256_v22 = vld [vmem:[#allocation5 + $0xf0] ss:$24 sps:$4 sm:$0xff]  }
  0x40   :  { %1316 = vmatprep.subr.bf16.mxu0 %v2236_v9  ;;  %v2257_v23 = vld [vmem:[#allocation5 + $0x3f0] ss:$24 sps:$4 sm:$0xff]   ;;  %v2258_v24 = vld [vmem:[#allocation5 + $0x124] ss:$24 sps:$4 sm:$0xff]   ;;  %v2262_v26 = vld [vmem:[#allocation5 + $0x120] ss:$24 sps:$4 sm:$0xff]  }
  0x41   :  { %v2260_v25 = vld [vmem:[#allocation5 + $0x424] ss:$24 sps:$4 sm:$0xff]   ;;  %v2263_v27 = vld [vmem:[#allocation5 + $0x420] ss:$24 sps:$4 sm:$0xff]   ;;  %v2264_v28 = vld [vmem:[#allocation5 + $0x154] ss:$24 sps:$4 sm:$0xff]  }
  0x42   :  { %1264 = vmatpush1.bf16.msra.mxu1 %v2238_v10  ;;  %v2266_v29 = vld [vmem:[#allocation5 + $0x454] ss:$24 sps:$4 sm:$0xff]   ;;  %v2268_v30 = vld [vmem:[#allocation5 + $0x150] ss:$24 sps:$4 sm:$0xff]   ;;  %v2270_v32 = vld [vmem:[#allocation5 + $0x184] ss:$24 sps:$4 sm:$0xff]  }
  0x43   :  { %1317 = vmatpush1.bf16.msra.mxu0 %v2239_v11  ;;  %1265 = vmatprep.subr.bf16.mxu1 %v2240_v12  ;;  %v2269_v31 = vld [vmem:[#allocation5 + $0x450] ss:$24 sps:$4 sm:$0xff]   ;;  %v2272_v33 = vld [vmem:[#allocation5 + $0x484] ss:$24 sps:$4 sm:$0xff]   ;;  %v2274_v34 = vld [vmem:[#allocation5 + $0x180] ss:$24 sps:$4 sm:$0xff]  }
  0x44   :  { %1318 = vmatprep.subr.bf16.mxu0 %v2242_v13  ;;  %v2275_v35 = vld [vmem:[#allocation5 + $0x480] ss:$24 sps:$4 sm:$0xff]   ;;  %v2276_v36 = vld [vmem:[#allocation5 + $0x1b4] ss:$24 sps:$4 sm:$0xff]   ;;  %v2280_v38 = vld [vmem:[#allocation5 + $0x1b0] ss:$24 sps:$4 sm:$0xff]  }
  0x45   :  { %v2278_v37 = vld [vmem:[#allocation5 + $0x4b4] ss:$24 sps:$4 sm:$0xff]   ;;  %v2281_v39 = vld [vmem:[#allocation5 + $0x4b0] ss:$24 sps:$4 sm:$0xff]   ;;  %v2282_v40 = vld [vmem:[#allocation5 + $0x1e4] ss:$24 sps:$4 sm:$0xff]  }
  0x46   :  { %1266 = vmatpush1.bf16.msra.mxu1 %v2244_v14  ;;  %v2284_v41 = vld [vmem:[#allocation5 + $0x4e4] ss:$24 sps:$4 sm:$0xff]   ;;  %v2286_v42 = vld [vmem:[#allocation5 + $0x1e0] ss:$24 sps:$4 sm:$0xff]   ;;  %v2288_v44 = vld [vmem:[#allocation5 + $0x214] ss:$24 sps:$4 sm:$0xff]  }
  0x47   :  { %1319 = vmatpush1.bf16.msra.mxu0 %v2245_v15  ;;  %1267 = vmatprep.subr.bf16.mxu1 %v2246_v16  ;;  %v2287_v43 = vld [vmem:[#allocation5 + $0x4e0] ss:$24 sps:$4 sm:$0xff]   ;;  %v2290_v45 = vld [vmem:[#allocation5 + $0x514] ss:$24 sps:$4 sm:$0xff]   ;;  %v2292_v46 = vld [vmem:[#allocation5 + $0x210] ss:$24 sps:$4 sm:$0xff]  }
  0x48   :  { %1320 = vmatprep.subr.bf16.mxu0 %v2248_v17  ;;  %v2293_v47 = vld [vmem:[#allocation5 + $0x510] ss:$24 sps:$4 sm:$0xff]   ;;  %v2802_v48 = vld [vmem:[#allocation2 + $0x4] ss:$16 sps:$4 sm:$0xff]   ;;  %v2804_v50 = vld [vmem:[#allocation2 + $0xc] ss:$16 sps:$4 sm:$0xff]  }
  0x49   :  { %v2294_v49 = vld [vmem:[#allocation5 + $0x244] ss:$24 sps:$4 sm:$0xff]   ;;  %1291 = vmatprep.mubr.bf16.mxu1 %v2802_v48  ;;  %1344 = vmatprep.mubr.bf16.mxu0 %v2804_v50  ;;  %v2298_v52 = vld [vmem:[#allocation5 + $0x240] ss:$24 sps:$4 sm:$0xff]   ;;  %v2300_v54 = vld [vmem:[#allocation5 + $0x274] ss:$24 sps:$4 sm:$0xff]  }
  0x4a   :  { %1268 = vmatpush1.bf16.msra.mxu1 %v2250_v18  ;;  %v2296_v51 = vld [vmem:[#allocation5 + $0x544] ss:$24 sps:$4 sm:$0xff]   ;;  %v2299_v53 = vld [vmem:[#allocation5 + $0x540] ss:$24 sps:$4 sm:$0xff]   ;;  %v2302_v55 = vld [vmem:[#allocation5 + $0x574] ss:$24 sps:$4 sm:$0xff]  }
  0x4b   :  { %1321 = vmatpush1.bf16.msra.mxu0 %v2251_v19  ;;  %1269 = vmatprep.subr.bf16.mxu1 %v2252_v20  ;;  %v2304_v56 = vld [vmem:[#allocation5 + $0x270] ss:$24 sps:$4 sm:$0xff]   ;;  %v2306_v58 = vld [vmem:[#allocation5 + $0x2a4] ss:$24 sps:$4 sm:$0xff]   ;;  %v2310_v60 = vld [vmem:[#allocation5 + $0x2a0] ss:$24 sps:$4 sm:$0xff]  }
  0x4c   :  { %1322 = vmatprep.subr.bf16.mxu0 %v2254_v21  ;;  %v2305_v57 = vld [vmem:[#allocation5 + $0x570] ss:$24 sps:$4 sm:$0xff]   ;;  %v2308_v59 = vld [vmem:[#allocation5 + $0x5a4] ss:$24 sps:$4 sm:$0xff]   ;;  %v2311_v61 = vld [vmem:[#allocation5 + $0x5a0] ss:$24 sps:$4 sm:$0xff]  }
  0x4d   :  { %v2312_v62 = vld [vmem:[#allocation5 + $0x2d4] ss:$24 sps:$4 sm:$0xff]   ;;  %v2316_v0 = vld [vmem:[#allocation5 + $0x2d0] ss:$24 sps:$4 sm:$0xff]   ;;  %v2335_v9 = vld [vmem:[#allocation5 + $0x44] ss:$24 sps:$4 sm:$0xff]  }
  0x4e   :  { %1270 = vmatpush1.bf16.msra.mxu1 %v2256_v22  ;;  %v2314_v63 = vld [vmem:[#allocation5 + $0x5d4] ss:$24 sps:$4 sm:$0xff]   ;;  %v2317_v1 = vld [vmem:[#allocation5 + $0x5d0] ss:$24 sps:$4 sm:$0xff]   ;;  %v2333_v11 = vld [vmem:[#allocation5 + $0x40] ss:$24 sps:$4 sm:$0xff]  }
  0x4f   :  { %1323 = vmatpush1.bf16.msra.mxu0 %v2257_v23  ;;  %1271 = vmatprep.subr.bf16.mxu1 %v2258_v24  ;;  %v2326_v2 = vld [vmem:[#allocation5 + $0xc] ss:$24 sps:$4 sm:$0xff]   ;;  %v2808_v4 = vld [vmem:[#allocation2] ss:$16 sps:$4 sm:$0xff]   ;;  %v2810_v5 = vld [vmem:[#allocation2 + $0x8] ss:$16 sps:$4 sm:$0xff]  }
  0x50   :  { %1324 = vmatprep.subr.bf16.mxu0 %v2260_v25  ;;  %v2329_v3 = vld [vmem:[#allocation5 + $0x14] ss:$24 sps:$4 sm:$0xff]   ;;  %v2324_v6 = vld [vmem:[#allocation5 + $0x8] ss:$24 sps:$4 sm:$0xff]   ;;  %v2330_v10 = vld [vmem:[#allocation5 + $0x38] ss:$24 sps:$4 sm:$0xff]  }
  0x51   :  { %v2327_v7 = vld [vmem:[#allocation5 + $0x10] ss:$24 sps:$4 sm:$0xff]   ;;  %v2332_v8 = vld [vmem:[#allocation5 + $0x3c] ss:$24 sps:$4 sm:$0xff]   ;;  %v2338_v12 = vld [vmem:[#allocation5 + $0x6c] ss:$24 sps:$4 sm:$0xff]  }
  0x52   :  { %1272 = vmatpush1.bf16.msra.mxu1 %v2262_v26  ;;  %v2341_v13 = vld [vmem:[#allocation5 + $0x74] ss:$24 sps:$4 sm:$0xff]   ;;  %v2336_v14 = vld [vmem:[#allocation5 + $0x68] ss:$24 sps:$4 sm:$0xff]   ;;  %v2347_v17 = vld [vmem:[#allocation5 + $0xa4] ss:$24 sps:$4 sm:$0xff]  }
  0x53   :  { %1325 = vmatpush1.bf16.msra.mxu0 %v2263_v27  ;;  %1273 = vmatprep.subr.bf16.mxu1 %v2264_v28  ;;  %v2339_v15 = vld [vmem:[#allocation5 + $0x70] ss:$24 sps:$4 sm:$0xff]   ;;  %v2344_v16 = vld [vmem:[#allocation5 + $0x9c] ss:$24 sps:$4 sm:$0xff]   ;;  %v2345_v19 = vld [vmem:[#allocation5 + $0xa0] ss:$24 sps:$4 sm:$0xff]  }
  0x54   :  { %1326 = vmatprep.subr.bf16.mxu0 %v2266_v29  ;;  %v2342_v18 = vld [vmem:[#allocation5 + $0x98] ss:$24 sps:$4 sm:$0xff]   ;;  %v2350_v20 = vld [vmem:[#allocation5 + $0xcc] ss:$24 sps:$4 sm:$0xff]   ;;  %v2348_v22 = vld [vmem:[#allocation5 + $0xc8] ss:$24 sps:$4 sm:$0xff]  }
  0x55   :  { %v2353_v21 = vld [vmem:[#allocation5 + $0xd4] ss:$24 sps:$4 sm:$0xff]   ;;  %v2351_v23 = vld [vmem:[#allocation5 + $0xd0] ss:$24 sps:$4 sm:$0xff]   ;;  %v2359_v25 = vld [vmem:[#allocation5 + $0x104] ss:$24 sps:$4 sm:$0xff]  }
  0x56   :  { %1274 = vmatpush1.bf16.msra.mxu1 %v2268_v30  ;;  %v2356_v24 = vld [vmem:[#allocation5 + $0xfc] ss:$24 sps:$4 sm:$0xff]   ;;  %v2354_v26 = vld [vmem:[#allocation5 + $0xf8] ss:$24 sps:$4 sm:$0xff]   ;;  %v2362_v28 = vld [vmem:[#allocation5 + $0x12c] ss:$24 sps:$4 sm:$0xff]  }
  0x57   :  { %1327 = vmatpush1.bf16.msra.mxu0 %v2269_v31  ;;  %1275 = vmatprep.subr.bf16.mxu1 %v2270_v32  ;;  %v2357_v27 = vld [vmem:[#allocation5 + $0x100] ss:$24 sps:$4 sm:$0xff]   ;;  %v2365_v29 = vld [vmem:[#allocation5 + $0x134] ss:$24 sps:$4 sm:$0xff]  }
  0x58   :  { %1328 = vmatprep.subr.bf16.mxu0 %v2272_v33  ;;  %v2814_v30 = vld [vmem:[#allocation2 + $0x24] ss:$16 sps:$4 sm:$0xff]   ;;  %v2816_v31 = vld [vmem:[#allocation2 + $0x2c] ss:$16 sps:$4 sm:$0xff]   ;;  %v2818_v32 = vld [vmem:[#allocation2 + $0x20] ss:$16 sps:$4 sm:$0xff]  }
  0x59   :  { %v2820_v33 = vld [vmem:[#allocation2 + $0x28] ss:$16 sps:$4 sm:$0xff]  }
  0x5a   :  { %1276 = vmatpush1.bf16.msra.mxu1 %v2274_v34  ;;  %v2360_v34 = vld [vmem:[#allocation5 + $0x128] ss:$24 sps:$4 sm:$0xff]  }
  0x5b   :  { %1329 = vmatpush1.bf16.msra.mxu0 %v2275_v35  ;;  %1277 = vmatprep.subr.bf16.mxu1 %v2276_v36  ;;  %v2363_v35 = vld [vmem:[#allocation5 + $0x130] ss:$24 sps:$4 sm:$0xff]   ;;  %v2368_v36 = vld [vmem:[#allocation5 + $0x15c] ss:$24 sps:$4 sm:$0xff]  }
  0x5c   :  { %1330 = vmatprep.subr.bf16.mxu0 %v2278_v37  ;;  %v2371_v37 = vld [vmem:[#allocation5 + $0x164] ss:$24 sps:$4 sm:$0xff]  }
  0x5e   :  { %1278 = vmatpush1.bf16.msra.mxu1 %v2280_v38  ;;  %v2366_v38 = vld [vmem:[#allocation5 + $0x158] ss:$24 sps:$4 sm:$0xff]  }
  0x5f   :  { %1331 = vmatpush1.bf16.msra.mxu0 %v2281_v39  ;;  %1279 = vmatprep.subr.bf16.mxu1 %v2282_v40  ;;  %v2369_v39 = vld [vmem:[#allocation5 + $0x160] ss:$24 sps:$4 sm:$0xff]   ;;  %v2374_v40 = vld [vmem:[#allocation5 + $0x18c] ss:$24 sps:$4 sm:$0xff]  }
  0x60   :  { %1332 = vmatprep.subr.bf16.mxu0 %v2284_v41  ;;  %v2377_v41 = vld [vmem:[#allocation5 + $0x194] ss:$24 sps:$4 sm:$0xff]  }
  0x62   :  { %1280 = vmatpush1.bf16.msra.mxu1 %v2286_v42  ;;  %v2372_v42 = vld [vmem:[#allocation5 + $0x188] ss:$24 sps:$4 sm:$0xff]  }
  0x63   :  { %1333 = vmatpush1.bf16.msra.mxu0 %v2287_v43  ;;  %1281 = vmatprep.subr.bf16.mxu1 %v2288_v44  ;;  %v2375_v43 = vld [vmem:[#allocation5 + $0x190] ss:$24 sps:$4 sm:$0xff]   ;;  %v2380_v44 = vld [vmem:[#allocation5 + $0x1bc] ss:$24 sps:$4 sm:$0xff]  }
  0x64   :  { %1334 = vmatprep.subr.bf16.mxu0 %v2290_v45  ;;  %v2383_v45 = vld [vmem:[#allocation5 + $0x1c4] ss:$24 sps:$4 sm:$0xff]  }
  0x66   :  { %1282 = vmatpush1.bf16.msra.mxu1 %v2292_v46  ;;  %v2378_v46 = vld [vmem:[#allocation5 + $0x1b8] ss:$24 sps:$4 sm:$0xff]  }
  0x67   :  { %1335 = vmatpush1.bf16.msra.mxu0 %v2293_v47  ;;  %1283 = vmatprep.subr.bf16.mxu1 %v2294_v49  ;;  %v2381_v47 = vld [vmem:[#allocation5 + $0x1c0] ss:$24 sps:$4 sm:$0xff]   ;;  %v2389_v49 = vld [vmem:[#allocation5 + $0x1f4] ss:$24 sps:$4 sm:$0xff]  }
  0x68   :  { %1336 = vmatprep.subr.bf16.mxu0 %v2296_v51  ;;  %v2384_v51 = vld [vmem:[#allocation5 + $0x1e8] ss:$24 sps:$4 sm:$0xff]  }
  0x6a   :  { %1284 = vmatpush1.bf16.msra.mxu1 %v2298_v52  ;;  %v2387_v52 = vld [vmem:[#allocation5 + $0x1f0] ss:$24 sps:$4 sm:$0xff]  }
  0x6b   :  { %1337 = vmatpush1.bf16.msra.mxu0 %v2299_v53  ;;  %1285 = vmatprep.subr.bf16.mxu1 %v2300_v54  ;;  %v2392_v53 = vld [vmem:[#allocation5 + $0x21c] ss:$24 sps:$4 sm:$0xff]  }
  0x6c   :  { %1338 = vmatprep.subr.bf16.mxu0 %v2302_v55  ;;  %v2395_v54 = vld [vmem:[#allocation5 + $0x224] ss:$24 sps:$4 sm:$0xff]   ;;  %v2390_v55 = vld [vmem:[#allocation5 + $0x218] ss:$24 sps:$4 sm:$0xff]  }
  0x6e   :  { %1286 = vmatpush1.bf16.msra.mxu1 %v2304_v56  ;;  %v2393_v56 = vld [vmem:[#allocation5 + $0x220] ss:$24 sps:$4 sm:$0xff]  }
  0x6f   :  { %1339 = vmatpush1.bf16.msra.mxu0 %v2305_v57  ;;  %1287 = vmatprep.subr.bf16.mxu1 %v2306_v58  ;;  %v2398_v57 = vld [vmem:[#allocation5 + $0x24c] ss:$24 sps:$4 sm:$0xff]  }
  0x70   :  { %1340 = vmatprep.subr.bf16.mxu0 %v2308_v59  ;;  %v2401_v58 = vld [vmem:[#allocation5 + $0x254] ss:$24 sps:$4 sm:$0xff]   ;;  %v2396_v59 = vld [vmem:[#allocation5 + $0x248] ss:$24 sps:$4 sm:$0xff]  }
  0x72   :  { %1288 = vmatpush1.bf16.msra.mxu1 %v2310_v60  ;;  %v2399_v60 = vld [vmem:[#allocation5 + $0x250] ss:$24 sps:$4 sm:$0xff]  }
  0x73   :  { %1341 = vmatpush1.bf16.msra.mxu0 %v2311_v61  ;;  %1289 = vmatprep.subr.bf16.mxu1 %v2312_v62  ;;  %v2404_v61 = vld [vmem:[#allocation5 + $0x27c] ss:$24 sps:$4 sm:$0xff]  }
  0x74   :  { %1342 = vmatprep.subr.bf16.mxu0 %v2314_v63  ;;  %v2407_v62 = vld [vmem:[#allocation5 + $0x284] ss:$24 sps:$4 sm:$0xff]   ;;  %v2402_v63 = vld [vmem:[#allocation5 + $0x278] ss:$24 sps:$4 sm:$0xff]  }
  0x76   :  { %1290 = vmatpush1.bf16.msra.mxu1 %v2316_v0  ;;  %v2405_v0 = vld [vmem:[#allocation5 + $0x280] ss:$24 sps:$4 sm:$0xff]  }
  0x77   :  { %1343 = vmatpush1.bf16.msra.mxu0 %v2317_v1  ;;  %1365 = vmatprep.subr.bf16.mxu1 %v2326_v2  ;;  %v2416_v1 = vld [vmem:[#allocation5 + $0x2ac] ss:$24 sps:$4 sm:$0xff]  }
  0x78   :  { %1471 = vmatprep.subr.bf16.mxu0 %v2329_v3  ;;  %v2419_v2 = vld [vmem:[#allocation5 + $0x2b4] ss:$24 sps:$4 sm:$0xff]   ;;  %v2414_v3 = vld [vmem:[#allocation5 + $0x2a8] ss:$24 sps:$4 sm:$0xff]  }
  0x79   :  { %1292 = vmatmul.mubr.bf16.vlgmr.msra.gmra.mrb[0].mxu1 %v2808_v4 }
  0x7a   :  { %1345 = vmatmul.mubr.bf16.vlgmr.msra.gmra.mrb[0].mxu0 %v2810_v5  ;;  %1366 = vmatpush1.bf16.msra.mxu1 %v2324_v6  ;;  %v2417_v6 = vld [vmem:[#allocation5 + $0x2b0] ss:$24 sps:$4 sm:$0xff]  }
  0x7b   :  { %1472 = vmatpush1.bf16.msra.mxu0 %v2327_v7  ;;  %1367 = vmatprep.subr.bf16.mxu1 %v2332_v8  ;;  %v2422_v7 = vld [vmem:[#allocation5 + $0x2dc] ss:$24 sps:$4 sm:$0xff]  }
  0x7c   :  { %1473 = vmatprep.subr.bf16.mxu0 %v2335_v9  ;;  %1301 = vmatprep.mubr.bf16.mxu1 %v2814_v30  ;;  %v2425_v8 = vld [vmem:[#allocation5 + $0x2e4] ss:$24 sps:$4 sm:$0xff]   ;;  %v2420_v9 = vld [vmem:[#allocation5 + $0x2d8] ss:$24 sps:$4 sm:$0xff]  }
  0x7d   :  { %1354 = vmatprep.mubr.bf16.mxu0 %v2816_v31 }
  0x7e   :  { %1368 = vmatpush1.bf16.msra.mxu1 %v2330_v10  ;;  %v2423_v10 = vld [vmem:[#allocation5 + $0x2e0] ss:$24 sps:$4 sm:$0xff]  }
  0x7f   :  { %1474 = vmatpush1.bf16.msra.mxu0 %v2333_v11  ;;  %1369 = vmatprep.subr.bf16.mxu1 %v2338_v12  ;;  %v2428_v11 = vld [vmem:[#allocation5 + $0x30c] ss:$24 sps:$4 sm:$0xff]  }
  0x80   :  { %1475 = vmatprep.subr.bf16.mxu0 %v2341_v13  ;;  %v2431_v12 = vld [vmem:[#allocation5 + $0x314] ss:$24 sps:$4 sm:$0xff]   ;;  %v2426_v13 = vld [vmem:[#allocation5 + $0x308] ss:$24 sps:$4 sm:$0xff]  }
  0x81   :  { %1302 = vmatmul.mubr.bf16.gmra.mrb[4].mxu1 %v2818_v32 }
  0x82   :  { %1370 = vmatpush1.bf16.msra.mxu1 %v2336_v14  ;;  %1355 = vmatmul.mubr.bf16.gmra.mrb[4].mxu0 %v2820_v33  ;;  %v2429_v14 = vld [vmem:[#allocation5 + $0x310] ss:$24 sps:$4 sm:$0xff]  }
  0x83   :  { %1476 = vmatpush1.bf16.msra.mxu0 %v2339_v15  ;;  %1371 = vmatprep.subr.bf16.mxu1 %v2344_v16  ;;  %v2434_v15 = vld [vmem:[#allocation5 + $0x33c] ss:$24 sps:$4 sm:$0xff]  }
  0x84   :  { %1477 = vmatprep.subr.bf16.mxu0 %v2347_v17  ;;  %1397 = vmatprep.mubr.bf16.mxu1 %v2802_v48  ;;  %v2437_v16 = vld [vmem:[#allocation5 + $0x344] ss:$24 sps:$4 sm:$0xff]   ;;  %v2432_v17 = vld [vmem:[#allocation5 + $0x338] ss:$24 sps:$4 sm:$0xff]  }
  0x85   :  { %1503 = vmatprep.mubr.bf16.mxu0 %v2802_v48  ;;  %v2386_v48 = vld [vmem:[#allocation5 + $0x1ec] ss:$24 sps:$4 sm:$0xff]  }
  0x86   :  { %1372 = vmatpush1.bf16.msra.mxu1 %v2342_v18  ;;  %v2435_v18 = vld [vmem:[#allocation5 + $0x340] ss:$24 sps:$4 sm:$0xff]  }
  0x87   :  { %1478 = vmatpush1.bf16.msra.mxu0 %v2345_v19  ;;  %1373 = vmatprep.subr.bf16.mxu1 %v2350_v20  ;;  %v2440_v19 = vld [vmem:[#allocation5 + $0x36c] ss:$24 sps:$4 sm:$0xff]  }
  0x88   :  { %1479 = vmatprep.subr.bf16.mxu0 %v2353_v21  ;;  %v2443_v20 = vld [vmem:[#allocation5 + $0x374] ss:$24 sps:$4 sm:$0xff]   ;;  %v2438_v21 = vld [vmem:[#allocation5 + $0x368] ss:$24 sps:$4 sm:$0xff]  }
  0x8a   :  { %1374 = vmatpush1.bf16.msra.mxu1 %v2348_v22  ;;  %v2441_v22 = vld [vmem:[#allocation5 + $0x370] ss:$24 sps:$4 sm:$0xff]  }
  0x8b   :  { %1480 = vmatpush1.bf16.msra.mxu0 %v2351_v23  ;;  %1375 = vmatprep.subr.bf16.mxu1 %v2356_v24  ;;  %v2446_v23 = vld [vmem:[#allocation5 + $0x39c] ss:$24 sps:$4 sm:$0xff]   ;;  %v2444_v24 = vld [vmem:[#allocation5 + $0x398] ss:$24 sps:$4 sm:$0xff]  }
  0x8c   :  { %1481 = vmatprep.subr.bf16.mxu0 %v2359_v25  ;;  %v2447_v25 = vld [vmem:[#allocation5 + $0x3a0] ss:$24 sps:$4 sm:$0xff]  }
  0x8e   :  { %1376 = vmatpush1.bf16.msra.mxu1 %v2354_v26  ;;  %v2452_v26 = vld [vmem:[#allocation5 + $0x3cc] ss:$24 sps:$4 sm:$0xff]  }
  0x8f   :  { %1482 = vmatpush1.bf16.msra.mxu0 %v2357_v27  ;;  %1377 = vmatprep.subr.bf16.mxu1 %v2362_v28  ;;  %v2455_v27 = vld [vmem:[#allocation5 + $0x3d4] ss:$24 sps:$4 sm:$0xff]   ;;  %v2450_v28 = vld [vmem:[#allocation5 + $0x3c8] ss:$24 sps:$4 sm:$0xff]  }
  0x90   :  { %1483 = vmatprep.subr.bf16.mxu0 %v2365_v29  ;;  %v2453_v29 = vld [vmem:[#allocation5 + $0x3d0] ss:$24 sps:$4 sm:$0xff]  }
  0x92   :  { %1378 = vmatpush1.bf16.msra.mxu1 %v2360_v34  ;;  %v2456_v34 = vld [vmem:[#allocation5 + $0x3f8] ss:$24 sps:$4 sm:$0xff]  }
  0x93   :  { %1484 = vmatpush1.bf16.msra.mxu0 %v2363_v35  ;;  %1379 = vmatprep.subr.bf16.mxu1 %v2368_v36  ;;  %v2459_v35 = vld [vmem:[#allocation5 + $0x400] ss:$24 sps:$4 sm:$0xff]   ;;  %v2464_v36 = vld [vmem:[#allocation5 + $0x42c] ss:$24 sps:$4 sm:$0xff]  }
  0x94   :  { %1485 = vmatprep.subr.bf16.mxu0 %v2371_v37  ;;  %v2467_v37 = vld [vmem:[#allocation5 + $0x434] ss:$24 sps:$4 sm:$0xff]  }
  0x96   :  { %1380 = vmatpush1.bf16.msra.mxu1 %v2366_v38  ;;  %v2462_v38 = vld [vmem:[#allocation5 + $0x428] ss:$24 sps:$4 sm:$0xff]  }
  0x97   :  { %1486 = vmatpush1.bf16.msra.mxu0 %v2369_v39  ;;  %1381 = vmatprep.subr.bf16.mxu1 %v2374_v40  ;;  %v2470_v39 = vld [vmem:[#allocation5 + $0x45c] ss:$24 sps:$4 sm:$0xff]  }
  0x98   :  { %1487 = vmatprep.subr.bf16.mxu0 %v2377_v41  ;;  %v2473_v40 = vld [vmem:[#allocation5 + $0x464] ss:$24 sps:$4 sm:$0xff]   ;;  %v2468_v41 = vld [vmem:[#allocation5 + $0x458] ss:$24 sps:$4 sm:$0xff]  }
  0x9a   :  { %1382 = vmatpush1.bf16.msra.mxu1 %v2372_v42  ;;  %v2471_v42 = vld [vmem:[#allocation5 + $0x460] ss:$24 sps:$4 sm:$0xff]  }
  0x9b   :  { %1488 = vmatpush1.bf16.msra.mxu0 %v2375_v43  ;;  %1383 = vmatprep.subr.bf16.mxu1 %v2380_v44  ;;  %v2476_v43 = vld [vmem:[#allocation5 + $0x48c] ss:$24 sps:$4 sm:$0xff]  }
  0x9c   :  { %1489 = vmatprep.subr.bf16.mxu0 %v2383_v45  ;;  %v2479_v44 = vld [vmem:[#allocation5 + $0x494] ss:$24 sps:$4 sm:$0xff]   ;;  %v2474_v45 = vld [vmem:[#allocation5 + $0x488] ss:$24 sps:$4 sm:$0xff]  }
  0x9e   :  { %1384 = vmatpush1.bf16.msra.mxu1 %v2378_v46  ;;  %v2477_v46 = vld [vmem:[#allocation5 + $0x490] ss:$24 sps:$4 sm:$0xff]  }
  0x9f   :  { %1490 = vmatpush1.bf16.msra.mxu0 %v2381_v47  ;;  %1385 = vmatprep.subr.bf16.mxu1 %v2386_v48  ;;  %v2482_v47 = vld [vmem:[#allocation5 + $0x4bc] ss:$24 sps:$4 sm:$0xff]  }
  0xa0   :  { %1491 = vmatprep.subr.bf16.mxu0 %v2389_v49  ;;  %v2485_v48 = vld [vmem:[#allocation5 + $0x4c4] ss:$24 sps:$4 sm:$0xff]   ;;  %v2480_v49 = vld [vmem:[#allocation5 + $0x4b8] ss:$24 sps:$4 sm:$0xff]  }
  0xa2   :  { %1386 = vmatpush1.bf16.msra.mxu1 %v2384_v51  ;;  %v2483_v51 = vld [vmem:[#allocation5 + $0x4c0] ss:$24 sps:$4 sm:$0xff]  }
  0xa3   :  { %1492 = vmatpush1.bf16.msra.mxu0 %v2387_v52  ;;  %1387 = vmatprep.subr.bf16.mxu1 %v2392_v53  ;;  %v2488_v52 = vld [vmem:[#allocation5 + $0x4ec] ss:$24 sps:$4 sm:$0xff]  }
  0xa4   :  { %1493 = vmatprep.subr.bf16.mxu0 %v2395_v54  ;;  %v2491_v53 = vld [vmem:[#allocation5 + $0x4f4] ss:$24 sps:$4 sm:$0xff]   ;;  %v2486_v54 = vld [vmem:[#allocation5 + $0x4e8] ss:$24 sps:$4 sm:$0xff]  }
  0xa6   :  { %1388 = vmatpush1.bf16.msra.mxu1 %v2390_v55  ;;  %v2489_v55 = vld [vmem:[#allocation5 + $0x4f0] ss:$24 sps:$4 sm:$0xff]  }
  0xa7   :  { %1494 = vmatpush1.bf16.msra.mxu0 %v2393_v56  ;;  %1389 = vmatprep.subr.bf16.mxu1 %v2398_v57  ;;  %v2494_v56 = vld [vmem:[#allocation5 + $0x51c] ss:$24 sps:$4 sm:$0xff]  }
  0xa8   :  { %1495 = vmatprep.subr.bf16.mxu0 %v2401_v58  ;;  %v2497_v57 = vld [vmem:[#allocation5 + $0x524] ss:$24 sps:$4 sm:$0xff]   ;;  %v2492_v58 = vld [vmem:[#allocation5 + $0x518] ss:$24 sps:$4 sm:$0xff]  }
  0xaa   :  { %1390 = vmatpush1.bf16.msra.mxu1 %v2396_v59  ;;  %v2495_v59 = vld [vmem:[#allocation5 + $0x520] ss:$24 sps:$4 sm:$0xff]  }
  0xab   :  { %1496 = vmatpush1.bf16.msra.mxu0 %v2399_v60  ;;  %1391 = vmatprep.subr.bf16.mxu1 %v2404_v61  ;;  %v2500_v60 = vld [vmem:[#allocation5 + $0x54c] ss:$24 sps:$4 sm:$0xff]  }
  0xac   :  { %1497 = vmatprep.subr.bf16.mxu0 %v2407_v62  ;;  %v2503_v61 = vld [vmem:[#allocation5 + $0x554] ss:$24 sps:$4 sm:$0xff]   ;;  %v2498_v62 = vld [vmem:[#allocation5 + $0x548] ss:$24 sps:$4 sm:$0xff]  }
  0xae   :  { %1392 = vmatpush1.bf16.msra.mxu1 %v2402_v63  ;;  %v2501_v63 = vld [vmem:[#allocation5 + $0x550] ss:$24 sps:$4 sm:$0xff]  }
  0xaf   :  { %1498 = vmatpush1.bf16.msra.mxu0 %v2405_v0  ;;  %1393 = vmatprep.subr.bf16.mxu1 %v2416_v1  ;;  %v2506_v0 = vld [vmem:[#allocation5 + $0x57c] ss:$24 sps:$4 sm:$0xff]  }
  0xb0   :  { %1499 = vmatprep.subr.bf16.mxu0 %v2419_v2  ;;  %v2509_v1 = vld [vmem:[#allocation5 + $0x584] ss:$24 sps:$4 sm:$0xff]   ;;  %v2504_v2 = vld [vmem:[#allocation5 + $0x578] ss:$24 sps:$4 sm:$0xff]  }
  0xb2   :  { %1394 = vmatpush1.bf16.msra.mxu1 %v2414_v3  ;;  %v2507_v3 = vld [vmem:[#allocation5 + $0x580] ss:$24 sps:$4 sm:$0xff]  }
  0xb3   :  { %1500 = vmatpush1.bf16.msra.mxu0 %v2417_v6  ;;  %1395 = vmatprep.subr.bf16.mxu1 %v2422_v7  ;;  %v2512_v6 = vld [vmem:[#allocation5 + $0x5ac] ss:$24 sps:$4 sm:$0xff]  }
  0xb4   :  { %1501 = vmatprep.subr.bf16.mxu0 %v2425_v8  ;;  %v2515_v7 = vld [vmem:[#allocation5 + $0x5b4] ss:$24 sps:$4 sm:$0xff]   ;;  %v2510_v8 = vld [vmem:[#allocation5 + $0x5a8] ss:$24 sps:$4 sm:$0xff]  }
  0xb6   :  { %1396 = vmatpush1.bf16.msra.mxu1 %v2420_v9  ;;  %v2513_v9 = vld [vmem:[#allocation5 + $0x5b0] ss:$24 sps:$4 sm:$0xff]  }
  0xb7   :  { %1502 = vmatpush1.bf16.msra.mxu0 %v2423_v10  ;;  %1418 = vmatprep.subr.bf16.mxu1 %v2428_v11  ;;  %v2518_v10 = vld [vmem:[#allocation5 + $0x5dc] ss:$24 sps:$4 sm:$0xff]  }
  0xb8   :  { %1524 = vmatprep.subr.bf16.mxu0 %v2431_v12  ;;  %v2521_v11 = vld [vmem:[#allocation5 + $0x5e4] ss:$24 sps:$4 sm:$0xff]   ;;  %v2516_v12 = vld [vmem:[#allocation5 + $0x5d8] ss:$24 sps:$4 sm:$0xff]  }
  0xb9   :  { %1398 = vmatmul.mubr.bf16.vlgmr.msra.gmra.mrb[8].mxu1 %v2808_v4 }
  0xba   :  { %1504 = vmatmul.mubr.bf16.vlgmr.msra.gmra.mrb[8].mxu0 %v2808_v4  ;;  %1419 = vmatpush1.bf16.msra.mxu1 %v2426_v13  ;;  %v2449_v4 = vld [vmem:[#allocation5 + $0x3a4] ss:$24 sps:$4 sm:$0xff]   ;;  %v2519_v13 = vld [vmem:[#allocation5 + $0x5e0] ss:$24 sps:$4 sm:$0xff]  }
  0xbb   :  { %1525 = vmatpush1.bf16.msra.mxu0 %v2429_v14  ;;  %1420 = vmatprep.subr.bf16.mxu1 %v2434_v15  ;;  %v1721_v14 = vld [vmem:[#allocation7 + $0x80] sm:$0xff]  ;;  %v1722_v15 = vld [vmem:[#allocation7 + $0x88] sm:$0xff] }
  0xbc   :  { %1526 = vmatprep.subr.bf16.mxu0 %v2437_v16  ;;  %1407 = vmatprep.mubr.bf16.mxu1 %v2814_v30  ;;  %v2140_v16 = vpack.c.bf16 %v1722_v15, %v1721_v14  ;;  %v1718_v14 = vld [vmem:[#allocation7 + $0x68] sm:$0xff] }
  0xbd   :  { %1513 = vmatprep.mubr.bf16.mxu0 %v2814_v30  ;;  %v2458_v30 = vld [vmem:[#allocation5 + $0x3fc] ss:$24 sps:$4 sm:$0xff]  }
  0xbe   :  { %1421 = vmatpush1.bf16.msra.mxu1 %v2432_v17  ;;  %v1705_v17 = vld [vmem:[#allocation7] sm:$0xff] }
  0xbf   :  { %1527 = vmatpush1.bf16.msra.mxu0 %v2435_v18  ;;  %1422 = vmatprep.subr.bf16.mxu1 %v2440_v19  ;;  %v1706_v18 = vld [vmem:[#allocation7 + $0x8] sm:$0xff] }
  0xc0   :  { %1528 = vmatprep.subr.bf16.mxu0 %v2443_v20  ;;  %v2142_v19 = vpack.c.bf16 %v1706_v18, %v1705_v17  ;;  %v1736_v17 = vld [vmem:[#allocation7 + $0xf8] sm:$0xff] }
  0xc1   :  { %1408 = vmatmul.mubr.bf16.gmra.mrb[12].mxu1 %v2818_v32 }
  0xc2   :  { %1514 = vmatmul.mubr.bf16.gmra.mrb[12].mxu0 %v2818_v32  ;;  %1423 = vmatpush1.bf16.msra.mxu1 %v2438_v21  ;;  %v2461_v32 = vld [vmem:[#allocation5 + $0x404] ss:$24 sps:$4 sm:$0xff]  }
  0xc3   :  { %1529 = vmatpush1.bf16.msra.mxu0 %v2441_v22  ;;  %1424 = vmatprep.subr.bf16.mxu1 %v2446_v23 }
  0xc4   :  { %1530 = vmatprep.subr.bf16.mxu0 %v2449_v4  ;;  %1450 = vmatprep.mubr.bf16.mxu1 %v2804_v50 }
  0xc5   :  { %1556 = vmatprep.mubr.bf16.mxu0 %v2804_v50  ;;  %v2465_v50 = vld [vmem:[#allocation5 + $0x430] ss:$24 sps:$4 sm:$0xff]  }
  0xc6   :  { %1425 = vmatpush1.bf16.msra.mxu1 %v2444_v24 }
  0xc7   :  { %1531 = vmatpush1.bf16.msra.mxu0 %v2447_v25  ;;  %1426 = vmatprep.subr.bf16.mxu1 %v2452_v26 }
  0xc8   :  { %1532 = vmatprep.subr.bf16.mxu0 %v2455_v27 }
  0xca   :  { %1427 = vmatpush1.bf16.msra.mxu1 %v2450_v28  ;;  %v1724_v28 = vld [vmem:[#allocation7 + $0x98] sm:$0xff] }
  0xcb   :  { %1533 = vmatpush1.bf16.msra.mxu0 %v2453_v29  ;;  %1428 = vmatprep.subr.bf16.mxu1 %v2458_v30 }
  0xcc   :  { %1534 = vmatprep.subr.bf16.mxu0 %v2461_v32  ;;  %v1707_v32 = vld [vmem:[#allocation7 + $0x10] sm:$0xff] }
  0xce   :  { %1429 = vmatpush1.bf16.msra.mxu1 %v2456_v34  ;;  %v1708_v34 = vld [vmem:[#allocation7 + $0x18] sm:$0xff] }
  0xcf   :  { %1535 = vmatpush1.bf16.msra.mxu0 %v2459_v35  ;;  %1430 = vmatprep.subr.bf16.mxu1 %v2464_v36  ;;  %v2146_v35 = vpack.c.bf16 %v1708_v34, %v1707_v32  ;;  %v1725_v36 = vld [vmem:[#allocation7 + $0xa0] sm:$0xff] }
  0xd0   :  { %1536 = vmatprep.subr.bf16.mxu0 %v2467_v37  ;;  %v1726_v37 = vld [vmem:[#allocation7 + $0xa8] sm:$0xff] }
  0xd2   :  { %1431 = vmatpush1.bf16.msra.mxu1 %v2462_v38  ;;  %v2148_v38 = vpack.c.bf16 %v1726_v37, %v1725_v36 }
  0xd3   :  { %1537 = vmatpush1.bf16.msra.mxu0 %v2465_v50  ;;  %1432 = vmatprep.subr.bf16.mxu1 %v2470_v39  ;;  %v1709_v50 = vld [vmem:[#allocation7 + $0x20] sm:$0xff]  ;;  %v1710_v39 = vld [vmem:[#allocation7 + $0x28] sm:$0xff] }
  0xd4   :  { %1538 = vmatprep.subr.bf16.mxu0 %v2473_v40  ;;  %v2150_v40 = vpack.c.bf16 %v1710_v39, %v1709_v50 }
  0xd6   :  { %1433 = vmatpush1.bf16.msra.mxu1 %v2468_v41 }
  0xd7   :  { %1539 = vmatpush1.bf16.msra.mxu0 %v2471_v42  ;;  %1434 = vmatprep.subr.bf16.mxu1 %v2476_v43 }
  0xd8   :  { %1540 = vmatprep.subr.bf16.mxu0 %v2479_v44 }
  0xda   :  { %1435 = vmatpush1.bf16.msra.mxu1 %v2474_v45 }
  0xdb   :  { %1541 = vmatpush1.bf16.msra.mxu0 %v2477_v46  ;;  %1436 = vmatprep.subr.bf16.mxu1 %v2482_v47 }
  0xdc   :  { %1542 = vmatprep.subr.bf16.mxu0 %v2485_v48 }
  0xde   :  { %1437 = vmatpush1.bf16.msra.mxu1 %v2480_v49 }
  0xdf   :  { %1543 = vmatpush1.bf16.msra.mxu0 %v2483_v51  ;;  %1438 = vmatprep.subr.bf16.mxu1 %v2488_v52 }
  0xe0   :  { %1544 = vmatprep.subr.bf16.mxu0 %v2491_v53 }
  0xe2   :  { %1439 = vmatpush1.bf16.msra.mxu1 %v2486_v54  ;;  %v1727_v54 = vld [vmem:[#allocation7 + $0xb0] sm:$0xff] }
  0xe3   :  { %1545 = vmatpush1.bf16.msra.mxu0 %v2489_v55  ;;  %1440 = vmatprep.subr.bf16.mxu1 %v2494_v56  ;;  %v1728_v55 = vld [vmem:[#allocation7 + $0xb8] sm:$0xff] }
  0xe4   :  { %1546 = vmatprep.subr.bf16.mxu0 %v2497_v57  ;;  %v2152_v56 = vpack.c.bf16 %v1728_v55, %v1727_v54  ;;  %v1711_v57 = vld [vmem:[#allocation7 + $0x30] sm:$0xff] }
  0xe6   :  { %1441 = vmatpush1.bf16.msra.mxu1 %v2492_v58  ;;  %v1712_v58 = vld [vmem:[#allocation7 + $0x38] sm:$0xff] }
  0xe7   :  { %1547 = vmatpush1.bf16.msra.mxu0 %v2495_v59  ;;  %1442 = vmatprep.subr.bf16.mxu1 %v2500_v60  ;;  %v2154_v59 = vpack.c.bf16 %v1712_v58, %v1711_v57  ;;  %v1729_v60 = vld [vmem:[#allocation7 + $0xc0] sm:$0xff] }
  0xe8   :  { %1548 = vmatprep.subr.bf16.mxu0 %v2503_v61  ;;  %v1730_v61 = vld [vmem:[#allocation7 + $0xc8] sm:$0xff] }
  0xea   :  { %1443 = vmatpush1.bf16.msra.mxu1 %v2498_v62  ;;  %v2156_v62 = vpack.c.bf16 %v1730_v61, %v1729_v60 }
  0xeb   :  { %1549 = vmatpush1.bf16.msra.mxu0 %v2501_v63  ;;  %1444 = vmatprep.subr.bf16.mxu1 %v2506_v0  ;;  %v1713_v63 = vld [vmem:[#allocation7 + $0x40] sm:$0xff]  ;;  %v1714_v0 = vld [vmem:[#allocation7 + $0x48] sm:$0xff] }
  0xec   :  { %1550 = vmatprep.subr.bf16.mxu0 %v2509_v1  ;;  %v2158_v1 = vpack.c.bf16 %v1714_v0, %v1713_v63 }
  0xee   :  { %1445 = vmatpush1.bf16.msra.mxu1 %v2504_v2  ;;  %v1731_v2 = vld [vmem:[#allocation7 + $0xd0] sm:$0xff] }
  0xef   :  { %1551 = vmatpush1.bf16.msra.mxu0 %v2507_v3  ;;  %1446 = vmatprep.subr.bf16.mxu1 %v2512_v6  ;;  %v1732_v3 = vld [vmem:[#allocation7 + $0xd8] sm:$0xff] }
  0xf0   :  { %1552 = vmatprep.subr.bf16.mxu0 %v2515_v7  ;;  %v2160_v6 = vpack.c.bf16 %v1732_v3, %v1731_v2  ;;  %v1715_v7 = vld [vmem:[#allocation7 + $0x50] sm:$0xff] }
  0xf2   :  { %1447 = vmatpush1.bf16.msra.mxu1 %v2510_v8  ;;  %v1716_v8 = vld [vmem:[#allocation7 + $0x58] sm:$0xff] }
  0xf3   :  { %1553 = vmatpush1.bf16.msra.mxu0 %v2513_v9  ;;  %1448 = vmatprep.subr.bf16.mxu1 %v2518_v10  ;;  %v2162_v9 = vpack.c.bf16 %v1716_v8, %v1715_v7  ;;  %v1733_v10 = vld [vmem:[#allocation7 + $0xe0] sm:$0xff] }
  0xf4   :  { %1554 = vmatprep.subr.bf16.mxu0 %v2521_v11  ;;  %v1734_v11 = vld [vmem:[#allocation7 + $0xe8] sm:$0xff] }
  0xf6   :  { %1449 = vmatpush1.bf16.msra.mxu1 %v2516_v12  ;;  %v2164_v12 = vpack.c.bf16 %v1734_v11, %v1733_v10 }
  0xf7   :  { %1555 = vmatpush1.bf16.msra.mxu0 %v2519_v13  ;;  %2172 = vmatprep.subr.bf16.mxu1 %v2140_v16  ;;  %v1717_v13 = vld [vmem:[#allocation7 + $0x60] sm:$0xff] }
  0xf8   :  { %2141 = vmatprep.subr.bf16.mxu0 %v2140_v16  ;;  %v2166_v15 = vpack.c.bf16 %v1718_v14, %v1717_v13  ;;  %v1735_v16 = vld [vmem:[#allocation7 + $0xf0] sm:$0xff] }
  0xf9   :  { %1451 = vmatmul.mubr.bf16.vlgmr.msra.gmra.mrb[8].mxu1 %v2810_v5  ;;  %v2168_v18 = vpack.c.bf16 %v1736_v17, %v1735_v16 }
  0xfa   :  { %1557 = vmatmul.mubr.bf16.vlgmr.msra.gmra.mrb[8].mxu0 %v2810_v5  ;;  %1460 = vmatprep.mubr.bf16.mxu1 %v2816_v31 }
  0xfb   :  { %1566 = vmatprep.mubr.bf16.mxu0 %v2816_v31  ;;  %2143 = vmatpush3.bf16.msra.mxu0 %v2142_v19 }
  0xfc   :  { %2180 = vmatpush3.bf16.msra.mxu1 %v2142_v19  ;;  %v1719_v19 = vld [vmem:[#allocation7 + $0x70] sm:$0xff] }
 0x101   :  { %1461 = vmatmul.mubr.bf16.gmra.mrb[12].mxu1 %v2820_v33 }
 0x102   :  { %1567 = vmatmul.mubr.bf16.gmra.mrb[12].mxu0 %v2820_v33  ;;  %v1723_v33 = vld [vmem:[#allocation7 + $0x90] sm:$0xff] }
 0x103   :  { %v2144_v30 = vpack.c.bf16 %v1724_v28, %v1723_v33 }
 0x105   :  { %2145 = vmatprep.subr.bf16.mxu0 %v2144_v30  ;;  %2173 = vmatprep.subr.bf16.mxu1 %v2144_v30 }
 0x106   :  { %2147 = vmatpush3.bf16.msra.mxu0 %v2146_v35  ;;  %2181 = vmatpush3.bf16.msra.mxu1 %v2146_v35 }
 0x107   :  { %2149 = vmatprep.subr.bf16.mxu0 %v2148_v38  ;;  %2174 = vmatprep.subr.bf16.mxu1 %v2148_v38 }
 0x10a   :  { %2151 = vmatpush3.bf16.msra.mxu0 %v2150_v40  ;;  %2182 = vmatpush3.bf16.msra.mxu1 %v2150_v40 }
 0x10b   :  { %2153 = vmatprep.subr.bf16.mxu0 %v2152_v56  ;;  %2175 = vmatprep.subr.bf16.mxu1 %v2152_v56 }
 0x10e   :  { %2155 = vmatpush3.bf16.msra.mxu0 %v2154_v59  ;;  %2183 = vmatpush3.bf16.msra.mxu1 %v2154_v59 }
 0x10f   :  { %2157 = vmatprep.subr.bf16.mxu0 %v2156_v62  ;;  %2176 = vmatprep.subr.bf16.mxu1 %v2156_v62 }
 0x112   :  { %2159 = vmatpush3.bf16.msra.mxu0 %v2158_v1  ;;  %2184 = vmatpush3.bf16.msra.mxu1 %v2158_v1 }
 0x113   :  { %2161 = vmatprep.subr.bf16.mxu0 %v2160_v6  ;;  %2177 = vmatprep.subr.bf16.mxu1 %v2160_v6 }
 0x116   :  { %2163 = vmatpush3.bf16.msra.mxu0 %v2162_v9  ;;  %2185 = vmatpush3.bf16.msra.mxu1 %v2162_v9 }
 0x117   :  { %2165 = vmatprep.subr.bf16.mxu0 %v2164_v12  ;;  %2178 = vmatprep.subr.bf16.mxu1 %v2164_v12 }
 0x11a   :  { %2167 = vmatpush3.bf16.msra.mxu0 %v2166_v15  ;;  %2186 = vmatpush3.bf16.msra.mxu1 %v2166_v15 }
 0x11b   :  { %2169 = vmatprep.subr.bf16.mxu0 %v2168_v18  ;;  %2179 = vmatprep.subr.bf16.mxu1 %v2168_v18 }
 0x14c   :  { %v1293_v20 = vpop.f32.mrb[0].mxu1 }
 0x14d   :  { %v1346_v21 = vpop.f32.mrb[0].mxu0  ;;  %v1295_v23 = vpop.f32.mrb[1].mxu1 }
 0x14e   :  { %v2842_v22 = vadd.f32 %v1346_v21, %v1293_v20  ;;  %v1348_v4 = vpop.f32.mrb[1].mxu0  ;;  %v1297_v24 = vpop.f32.mrb[2].mxu1  ;;  %v1720_v20 = vld [vmem:[#allocation7 + $0x78] sm:$0xff] }
 0x14f   :  { %v2844_v5 = vadd.f32 %v1348_v4, %v1295_v23  ;;  %v1350_v25 = vpop.f32.mrb[2].mxu0  ;;  %v1299_v26 = vpop.f32.mrb[3].mxu1  ;;  %v2170_v21 = vpack.c.bf16 %v1720_v20, %v1719_v19 }
 0x150   :  { %v2846_v31 = vadd.f32 %v1350_v25, %v1297_v24  ;;  %v1352_v27 = vpop.f32.mrb[3].mxu0  ;;  %v2075_v23 = vmul.f32 -1.442695, %v2842_v22 }
 0x151   :  { %v2848_v29 = vadd.f32 %v1352_v27, %v1299_v26  ;;  %2171 = vmatpush3.bf16.msra.mxu0 %v2170_v21  ;;  %2187 = vmatpush3.bf16.msra.mxu1 %v2170_v21  ;;  %v2076_v4 = vmul.f32 -1.442695, %v2844_v5 }
 0x152   :  { %v2077_v24 = vmul.f32 -1.442695, %v2846_v31  ;;  %2522 = vpow2.f32 %v2075_v23 }
 0x153   :  { %v2078_v25 = vmul.f32 -1.442695, %v2848_v29  ;;  %2524 = vpow2.f32 %v2076_v4 }
 0x154   :  { %v1303_v41 = vpop.f32.mrb[4].mxu1  ;;  %2526 = vpow2.f32 %v2077_v24 }
 0x155   :  { %v1356_v42 = vpop.f32.mrb[4].mxu0  ;;  %v1305_v44 = vpop.f32.mrb[5].mxu1  ;;  %2528 = vpow2.f32 %v2078_v25 }
 0x156   :  { %v2850_v43 = vadd.f32 %v1356_v42, %v1303_v41  ;;  %v1358_v45 = vpop.f32.mrb[5].mxu0  ;;  %v1307_v47 = vpop.f32.mrb[6].mxu1 }
 0x157   :  { %v2852_v46 = vadd.f32 %v1358_v45, %v1305_v44  ;;  %v1360_v48 = vpop.f32.mrb[6].mxu0  ;;  %v1309_v51 = vpop.f32.mrb[7].mxu1 }
 0x158   :  { %v2854_v49 = vadd.f32 %v1360_v48, %v1307_v47  ;;  %v1362_v52 = vpop.f32.mrb[7].mxu0  ;;  %v2079_v26 = vmul.f32 -1.442695, %v2850_v43 }
 0x159   :  { %v2856_v53 = vadd.f32 %v1362_v52, %v1309_v51  ;;  %v2080_v27 = vmul.f32 -1.442695, %v2852_v46 }
 0x15a   :  { %v2081_v33 = vmul.f32 -1.442695, %v2854_v49  ;;  %2530 = vpow2.f32 %v2079_v26 }
 0x15b   :  { %2532 = vpow2.f32 %v2080_v27  ;;  %v2082_v38 = vmul.f32 -1.442695, %v2856_v53 }
 0x15c   :  { %2534 = vpow2.f32 %v2081_v33  ;;  %v2523_v22 = vpop.eup %2522 }
 0x15d   :  { %v2525_v28 = vpop.eup %2524  ;;  %v1601_v31 = vadd.f32 1.0, %v2523_v22 }
 0x15e   :  { %v2527_v5 = vpop.eup %2526  ;;  %v1602_v32 = vadd.f32 1.0, %v2525_v28 }
 0x15f   :  { %v2529_v30 = vpop.eup %2528  ;;  %v1603_v34 = vadd.f32 1.0, %v2527_v5  ;;  %2536 = vrcp.f32 %v1601_v31 }
 0x160   :  { %v1604_v36 = vadd.f32 1.0, %v2529_v30  ;;  %2538 = vrcp.f32 %v1602_v32 }
 0x161   :  { %2540 = vrcp.f32 %v1603_v34 }
 0x162   :  { %2542 = vrcp.f32 %v1604_v36 }
 0x163   :  { %2544 = vpow2.f32 %v2082_v38 }
 0x164   :  { %v2531_v29 = vpop.eup %2530 }
 0x165   :  { %v2533_v35 = vpop.eup %2532  ;;  %v1605_v50 = vadd.f32 1.0, %v2531_v29 }
 0x166   :  { %v2535_v37 = vpop.eup %2534  ;;  %v1606_v39 = vadd.f32 1.0, %v2533_v35 }
 0x167   :  { %v1607_v40 = vadd.f32 1.0, %v2535_v37  ;;  %2546 = vrcp.f32 %v1605_v50 }
 0x168   :  { %2548 = vrcp.f32 %v1606_v39 }
 0x169   :  { %2550 = vrcp.f32 %v1607_v40  ;;  %v2537_v49 = vpop.eup %2536 }
 0x16a   :  { %v2539_v54 = vpop.eup %2538 }
 0x16b   :  { %v2541_v56 = vpop.eup %2540 }
 0x16c   :  { %v2543_v57 = vpop.eup %2542 }
 0x16d   :  { %v2545_v58 = vpop.eup %2544 }
 0x16e   :  { %v1608_v30 = vadd.f32 1.0, %v2545_v58 }
 0x171   :  { %v2547_v59 = vpop.eup %2546 }
 0x172   :  { %v2549_v62 = vpop.eup %2548 }
 0x173   :  { %v2551_v2 = vpop.eup %2550 }
 0x1cc   :  { %v1452_v41 = vpop.f32.mrb[8].mxu1 }
 0x1cd   :  { %v1558_v42 = vpop.f32.mrb[8].mxu0  ;;  %2552 = vtanh.f32 %v1452_v41  ;;  %v1454_v44 = vpop.f32.mrb[9].mxu1 }
 0x1ce   :  { %v2083_v43 = vmul.f32 -1.442695, %v1558_v42  ;;  %v1560_v45 = vpop.f32.mrb[9].mxu0  ;;  %2554 = vtanh.f32 %v1454_v44  ;;  %v1456_v47 = vpop.f32.mrb[10].mxu1 }
 0x1cf   :  { %v2084_v46 = vmul.f32 -1.442695, %v1560_v45  ;;  %v1562_v48 = vpop.f32.mrb[10].mxu0  ;;  %v1458_v52 = vpop.f32.mrb[11].mxu1 }
 0x1d0   :  { %2556 = vpow2.f32 %v2083_v43  ;;  %v2085_v51 = vmul.f32 -1.442695, %v1562_v48  ;;  %v1564_v53 = vpop.f32.mrb[11].mxu0 }
 0x1d1   :  { %2558 = vpow2.f32 %v2084_v46  ;;  %v2086_v55 = vmul.f32 -1.442695, %v1564_v53 }
 0x1d2   :  { %2560 = vtanh.f32 %v1456_v47 }
 0x1d3   :  { %2562 = vpow2.f32 %v2085_v51 }
 0x1d4   :  { %2564 = vtanh.f32 %v1458_v52  ;;  %v1462_v60 = vpop.f32.mrb[12].mxu1 }
 0x1d5   :  { %2566 = vpow2.f32 %v2086_v55  ;;  %v1568_v61 = vpop.f32.mrb[12].mxu0  ;;  %v1464_v0 = vpop.f32.mrb[13].mxu1 }
 0x1d6   :  { %2568 = vtanh.f32 %v1462_v60  ;;  %v2087_v63 = vmul.f32 -1.442695, %v1568_v61  ;;  %v1570_v1 = vpop.f32.mrb[13].mxu0  ;;  %v1466_v6 = vpop.f32.mrb[14].mxu1 }
 0x1d7   :  { %2570 = vtanh.f32 %v1464_v0  ;;  %v2088_v3 = vmul.f32 -1.442695, %v1570_v1  ;;  %v1572_v7 = vpop.f32.mrb[14].mxu0  ;;  %v2553_v8 = vpop.eup %2552 }
 0x1d8   :  { %2572 = vpow2.f32 %v2087_v63  ;;  %v1468_v9 = vpop.f32.mrb[15].mxu1  ;;  %v1574_v10 = vpop.f32.mrb[15].mxu0  ;;  %v1681_v12 = vmul.f32 %v2553_v8, %v2537_v49  ;;  %v2089_v34 = vmul.f32 -1.442695, %v1572_v7  ;;  %v2091_v7 = vld [vmem:[%s2887_s3] ss:$0 sm:$0xff] }
 0x1d9   :  { %v2555_v11 = vpop.eup %2554  ;;  %2574 = vpow2.f32 %v2088_v3  ;;  %v2090_v38 = vmul.f32 -1.442695, %v1574_v10  ;;  %s2737_s3 = smov [#allocation8]  }
 0x1da   :  { %v2557_v13 = vpop.eup %2556  ;;  %v1682_v14 = vmul.f32 %v2555_v11, %v2539_v54  ;;  %2576 = vtanh.f32 %v1466_v6  ;;  %s1862_s30 = sshll.u32 %s2737_s3, 4  ;;  %s1863_s30 = int_to_ptr.vmem [resolvable:$true] %s1862_s30 }
 0x1db   :  { %v2559_v15 = vpop.eup %2558  ;;  %2578 = vtanh.f32 %v1681_v12  ;;  %v1657_v16 = vadd.f32 1.0, %v2557_v13  ;;  %s2700_s5 = scalar_lea.vmem %s1863_s30, 512  ;;  %p2705_p11 = scmp.lt.s32.totalorder %s1863_s30, %s1863_s30 }
 0x1dc   :  { %v2561_v17 = vpop.eup %2560  ;;  %2580 = vtanh.f32 %v1682_v14  ;;  %v1658_v18 = vadd.f32 1.0, %v2559_v15  ;;  %p2701_p10 = scmp.ne.s32.totalorder %s1863_s30, %s2700_s5  ;;  %p2706_p12 = scmp.lt.s32.totalorder %s2700_s5, %s2700_s5 }
 0x1dd   :  { %v2563_v19 = vpop.eup %2562  ;;  %2582 = vrcp.f32 %v1657_v16  ;;  %v1683_v20 = vmul.f32 %v2561_v17, %v2541_v56 }
 0x1de   :  { %v2565_v21 = vpop.eup %2564  ;;  %2584 = vrcp.f32 %v1658_v18  ;;  %v1659_v23 = vadd.f32 1.0, %v2563_v19  ;;  %p2707_p13 = por %p2706_p12, %p2705_p11 }
 0x1df   :  { %v2567_v4 = vpop.eup %2566  ;;  %2586 = vtanh.f32 %v1683_v20  ;;  %v1684_v24 = vmul.f32 %v2565_v21, %v2543_v57 }
 0x1e0   :  { %v2569_v25 = vpop.eup %2568  ;;  %2588 = vrcp.f32 %v1659_v23  ;;  %v1660_v26 = vadd.f32 1.0, %v2567_v4  ;;  %p2708_p0 = pnand %p2707_p13, %p2701_p10 }
 0x1e1   :  { %v2571_v27 = vpop.eup %2570  ;;  %2590 = vtanh.f32 %v1684_v24  ;;  %v1685_v33 = vmul.f32 %v2569_v25, %v2547_v59 }
 0x1e2   :  { %v2573_v22 = vpop.eup %2572  ;;  %2592 = vrcp.f32 %v1660_v26  ;;  %v1686_v28 = vmul.f32 %v2571_v27, %v2549_v62 }
 0x1e3   :  { %v2575_v5 = vpop.eup %2574  ;;  %2594 = vtanh.f32 %v1685_v33  ;;  %v1661_v31 = vadd.f32 1.0, %v2573_v22 }
 0x1e4   :  { %v2577_v32 = vpop.eup %2576  ;;  %2596 = vtanh.f32 %v1686_v28  ;;  %v1662_v29 = vadd.f32 1.0, %v2575_v5 }
 0x1e5   :  { %v2579_v35 = vpop.eup %2578  ;;  %2598 = vrcp.f32 %v1661_v31  ;;  %v1687_v36 = vmul.f32 %v2577_v32, %v2551_v2 }
 0x1e6   :  { %v2581_v37 = vpop.eup %2580  ;;  %2600 = vrcp.f32 %v1662_v29 }
 0x1e7   :  { %v2583_v50 = vpop.eup %2582  ;;  %2602 = vrcp.f32 %v1608_v30 }
 0x1e8   :  { %v2585_v39 = vpop.eup %2584  ;;  %2604 = vpow2.f32 %v2089_v34  ;;  %v1697_v40 = vmul.f32 %v2583_v50, %v2579_v35 }
 0x1e9   :  { %v2587_v41 = vpop.eup %2586  ;;  %2606 = vtanh.f32 %v1468_v9  ;;  %v1698_v42 = vmul.f32 %v2585_v39, %v2581_v37 }
 0x1ea   :  { %v2589_v43 = vpop.eup %2588  ;;  %2608 = vpow2.f32 %v2090_v38 }
 0x1eb   :  { %v2591_v44 = vpop.eup %2590  ;;  %1808 = vmatprep.mubr.f32.mxu0 %v1698_v42  ;;  %v1699_v45 = vmul.f32 %v2589_v43, %v2587_v41  ;;  %2610 = vtanh.f32 %v1687_v36 }
 0x1ec   :  { %v2593_v46 = vpop.eup %2592  ;;  %1809 = vmatmul.mubr.f32.vlgmr.msra.gmra.mrb[16].mxu0 %v1697_v40 }
 0x1ed   :  { %v2595_v47 = vpop.eup %2594  ;;  %v1700_v48 = vmul.f32 %v2593_v46, %v2591_v44 }
 0x1ee   :  { %v2597_v49 = vpop.eup %2596 }
 0x1ef   :  { %v2599_v51 = vpop.eup %2598  ;;  %1813 = vmatprep.mubr.f32.mxu0 %v1700_v48 }
 0x1f0   :  { %v2601_v52 = vpop.eup %2600  ;;  %1814 = vmatmul.mubr.f32.gmra.mrb[18].mxu0 %v1699_v45  ;;  %v1701_v53 = vmul.f32 %v2599_v51, %v2595_v47 }
 0x1f1   :  { %v2603_v54 = vpop.eup %2602  ;;  %v1702_v55 = vmul.f32 %v2601_v52, %v2597_v49 }
 0x1f2   :  { %v2605_v56 = vpop.eup %2604 }
 0x1f3   :  { %v2607_v57 = vpop.eup %2606  ;;  %v1663_v58 = vadd.f32 1.0, %v2605_v56  ;;  %1818 = vmatprep.mubr.f32.mxu1 %v1702_v55 }
 0x1f4   :  { %v2609_v59 = vpop.eup %2608  ;;  %v1688_v60 = vmul.f32 %v2607_v57, %v2603_v54  ;;  %1819 = vmatmul.mubr.f32.vlgmr.msra.gmra.mrb[16].mxu1 %v1701_v53 }
 0x1f5   :  { %2612 = vrcp.f32 %v1663_v58  ;;  %v1664_v61 = vadd.f32 1.0, %v2609_v59  ;;  %v2611_v62 = vpop.eup %2610 }
 0x1f6   :  { %2614 = vtanh.f32 %v1688_v60 }
 0x1f7   :  { %2616 = vrcp.f32 %v1664_v61 }
 0x1ff   :  { %v2613_v63 = vpop.eup %2612 }
 0x200   :  { %v2615_v0 = vpop.eup %2614  ;;  %v1703_v1 = vmul.f32 %v2613_v63, %v2611_v62 }
 0x201   :  { %v2617_v2 = vpop.eup %2616 }
 0x202   :  { %v1704_v3 = vmul.f32 %v2617_v2, %v2615_v0 }
 0x204   :  { %1823 = vmatprep.mubr.f32.mxu1 %v1704_v3 }
 0x205   :  { %1824 = vmatmul.mubr.f32.gmra.mrb[18].mxu1 %v1703_v1 }
 0x2bf   :  { %v2128_v6 = vpop.f32.mrb[16].mxu0 }
 0x2c0   :  { %v2129_v8 = vpop.f32.mrb[17].mxu0 }
 0x2c1   :  { %v2130_v9 = vadd.f32 %v2129_v8, %v2128_v6 }
 0x2c3   :  { %v1811_v10 = vadd.f32 %v2130_v9, %v2091_v7  ;;  %v2131_v11 = vpop.f32.mrb[18].mxu0 }
 0x2c4   :  { %v2132_v12 = vpop.f32.mrb[19].mxu0 }
 0x2c5   :  { %v2092_v13 = vmul.f32 -1.442695, %v1811_v10  ;;  %v2133_v14 = vadd.f32 %v2132_v12, %v2131_v11 }
 0x2c7   :  { %2618 = vpow2.f32 %v2092_v13  ;;  %v1816_v15 = vadd.f32 %v2133_v14, %v2091_v7  ;;  %v2134_v16 = vpop.f32.mrb[16].mxu1 }
 0x2c8   :  { %v2135_v17 = vpop.f32.mrb[17].mxu1 }
 0x2c9   :  { %v2093_v18 = vmul.f32 -1.442695, %v1816_v15  ;;  %v2136_v19 = vadd.f32 %v2135_v17, %v2134_v16 }
 0x2cb   :  { %2620 = vpow2.f32 %v2093_v18  ;;  %v1821_v20 = vadd.f32 %v2136_v19, %v2091_v7 }
 0x2cd   :  { %v2094_v21 = vmul.f32 -1.442695, %v1821_v20 }
 0x2cf   :  { %2622 = vpow2.f32 %v2094_v21 }
 0x2d1   :  { %v2619_v23 = vpop.eup %2618 }
 0x2d2   :  { %v1841_v4 = vadd.f32 1.0, %v2619_v23 }
 0x2d4   :  { %2624 = vrcp.f32 %v1841_v4 }
 0x2d5   :  { %v2621_v24 = vpop.eup %2620 }
 0x2d6   :  { %v1842_v25 = vadd.f32 1.0, %v2621_v24 }
 0x2d8   :  { %2626 = vrcp.f32 %v1842_v25  ;;  %v2137_v26 = vpop.f32.mrb[18].mxu1 }
 0x2d9   :  { %v2623_v27 = vpop.eup %2622  ;;  %v2138_v33 = vpop.f32.mrb[19].mxu1 }
 0x2da   :  { %v1843_v22 = vadd.f32 1.0, %v2623_v27  ;;  %v2139_v28 = vadd.f32 %v2138_v33, %v2137_v26 }
 0x2dc   :  { %2628 = vrcp.f32 %v1843_v22  ;;  %v1826_v5 = vadd.f32 %v2139_v28, %v2091_v7 }
 0x2de   :  { %v2625_v30 = vpop.eup %2624  ;;  %v2095_v31 = vmul.f32 -1.442695, %v1826_v5 }
 0x2df   :  { %1853 = vst [vmem:[#allocation8] sm:$0xff] %v2625_v30 }
 0x2e0   :  { %2630 = vpow2.f32 %v2095_v31 }
 0x2e2   :  { %v2627_v32 = vpop.eup %2626 }
 0x2e3   :  { %1854 = vst [vmem:[#allocation8 + $0x8] sm:$0xff] %v2627_v32 }
 0x2e6   :  { %v2629_v29 = vpop.eup %2628 }
 0x2e7   :  { %1855 = vst [vmem:[#allocation8 + $0x10] sm:$0xff] %v2629_v29 }
 0x2ea   :  { %v2631_v34 = vpop.eup %2630 }
 0x2eb   :  { %v1844_v35 = vadd.f32 1.0, %v2631_v34 }
 0x2ed   :  { %2632 = vrcp.f32 %v1844_v35 }
 0x2f7   :  { %v2633_v36 = vpop.eup %2632 }
 0x2f8   :  { %1856 = vst [vmem:[#allocation8 + $0x18] sm:$0xff] %v2633_v36 }
 0x2f9   :  { %2711 = shalt.err (!%p2708_p0)
}
 0x2fa   :  { %s2712_s8 = scalar_lea.hbm %s2888_s4, 512 }
 0x2fb   :  { %p2713_p1 = scmp.ne.s32.totalorder %s2888_s4, %s2712_s8  ;;  %p2716_p2 = scmp.lt.u32.totalorder %s2712_s8, %s2888_s4 }
 0x2fd   :  { %p2718_p3 = pnand %p2716_p2, %p2713_p1 }
 0x2ff   :  { %2721 = shalt.err (!%p2718_p3)
}
 0x300   :  { %1868 = dma.vmem_to_hbm [thread:$0]  %s1863_s30, 512, %s2888_s4, [#allocation4], %s2735_s0, %s2735_s0, %s2736_s26  }
 0x301   :  { %2726 = dma.done.wait [#allocation4], 512  }
 0x302   :  { %2727 = vsyncadd [#allocation4], 4294966784 }
 0x303   :  { %1872 = vsyncpa [#allocation3], 1 }
 0x304   :  { %1873 = vsyncpa [#allocation6], 1 }
 0x305   :  { %1874 = vsyncpa [#allocation4], 1 }

</bundles_post_ra>
